<compile_context>
chip_gen: v7x
topology: tpu7x:2x2x1
jax: 0.10.0
libtpu: 0.0.40
codegen_flags: <defaults>
</compile_context>

<pallas_src>
import functools

import jax
import jax.numpy as jnp
from jax import lax
from jax.experimental import pallas as pl
from jax.experimental.pallas import tpu as pltpu


LANES = 128
STRIP_ROWS = 512          # rows per inner reduction strip (bounds live temps)


def _round_up(x, m):
    return ((x + m - 1) // m) * m


def _device_defaults():
    """(num_cores, max_tile_rows, vmem_cap_bytes) per TPU generation."""
    try:
        kind = jax.devices()[0].device_kind.lower()
    except Exception:
        kind = ""
    if "v7" in kind:
        # 2 TensorCores, 64 MiB VMEM/TC, 3.2 TB/s HBM: big tiles, tight cap.
        return 2, 8192, 48 * 1024 * 1024
    if "v6" in kind:
        return 1, 8192, 96 * 1024 * 1024
    # v5e (16 MiB default scoped VMEM) and unknown chips: conservative tiles.
    return 1, 4096, 64 * 1024 * 1024


def _laplace_partial_kernel(*refs, order, min_noise, log_dispersion,
                            n_valid, tile_rows, tiles_per_core, total_tiles,
                            strip_rows, mask_last_tile, gate_oob):
    if order == 1:
        c_ref, y_ref, out_ref = refs
        d_ref = None
    else:
        c_ref, d_ref, y_ref, out_ref = refs

    p = pl.program_id(0)
    i = pl.program_id(1)
    tile_idx = p * tiles_per_core + i

    # out_ref is resident across the inner ("arbitrary") axis: init once/core.
    @pl.when(i == 0)
    def _():
        out_ref[...] = jnp.zeros_like(out_ref)

    def strip(row0, rows, base_row):
        # base_row: static global row of this tile's first row (boundary tile
        # only; None => no masking needed for this tile).
        sl = pl.ds(row0, rows)
        c = c_ref[sl, :].astype(jnp.float32)
        y = y_ref[sl, :].astype(jnp.float32)
        deviation = jnp.abs(c - y)
        if order == 1:
            loss = deviation
        else:
            d = d_ref[sl, :].astype(jnp.float32)
            if log_dispersion:
                mad = jnp.exp(d)
                log_mad = d
            else:
                mad = d
                log_mad = jnp.log(d + 1e-09)
            num = deviation + min_noise if min_noise != 0.0 else deviation
            # multiply by exact reciprocal (keeps the +1e-9 epsilon semantics)
            loss = num * pl.reciprocal(mad + 1e-09, approx=False) + log_mad
        if base_row is not None:
            # Two-level (row, lane) validity check: no int32 overflow even for
            # huge tensors, and only the boundary tile pays for the iotas.
            grow = base_row + row0 + lax.broadcasted_iota(
                jnp.int32, (rows, LANES), 0)
            full_rows = n_valid // LANES
            rem_lanes = n_valid % LANES
            if rem_lanes == 0:
                valid = grow < full_rows
            else:
                lane = lax.broadcasted_iota(jnp.int32, (rows, LANES), 1)
                valid = (grow < full_rows) | (
                    (grow == full_rows) & (lane < rem_lanes))
            loss = jnp.where(valid, loss, jnp.float32(0.0))
        # reduce the strip down to one (8, 128) vreg of partial sums (VPU adds
        # only; the single cross-lane reduce happens in the wrapper).
        out_ref[...] += jnp.sum(loss.reshape(rows // 8, 8, LANES), axis=0)

    def accumulate(base_row):
        n_full = tile_rows // strip_rows
        rem = tile_rows % strip_rows
        if n_full == 1:
            strip(0, strip_rows, base_row)
        elif n_full > 1:
            def body(s, carry):
                strip(pl.multiple_of(s * strip_rows, 8), strip_rows, base_row)
                return carry
            lax.fori_loop(0, n_full, body, 0, unroll=n_full <= 8)
        if rem > 0:
            strip(n_full * strip_rows, rem, base_row)

    if mask_last_tile:
        # Interior tiles: fully valid, no mask work.  Boundary tile: masked.
        # Any duplicated (clamped) out-of-range grid steps are skipped.
        @pl.when(tile_idx < total_tiles - 1)
        def _():
            accumulate(None)

        @pl.when(tile_idx == total_tiles - 1)
        def _():
            accumulate((total_tiles - 1) * tile_rows)
    elif gate_oob:
        @pl.when(tile_idx < total_tiles)
        def _():
            accumulate(None)
    else:
        accumulate(None)


def laplace_mle_loss(center, dispersion, y, *, order=2, min_noise=0.0,
                     log_dispersion=True, normalizer=None,
                     num_cores=None, max_tile_rows=None, vmem_cap_bytes=None):
    """JAX/Pallas equivalent of LaplaceMLELoss.forward (returns a scalar)."""
    assert center.shape == y.shape
    if order != 1:
        assert dispersion.shape == center.shape

    dc, dmax, dcap = _device_defaults()
    num_cores = dc if num_cores is None else num_cores
    max_tile_rows = dmax if max_tile_rows is None else max_tile_rows
    vmem_cap_bytes = dcap if vmem_cap_bytes is None else vmem_cap_bytes

    streamed = (center, y) if order == 1 else (center, dispersion, y)
    # Sublane alignment for the block row count (8 for f32, 16 for bf16, ...).
    min_itemsize = min(jnp.dtype(a.dtype).itemsize for a in streamed)
    row_align = 8 * max(1, 4 // max(1, min_itemsize))

    n_elems = int(center.size)
    m_rows = pl.cdiv(n_elems, LANES)

    # Lane-dense (R, 128) slab.  128-aligned element counts -> zero-copy
    # reshape (no extra HBM pass); partial boundary blocks / ragged tails are
    # masked in-kernel on the boundary tile only.  Only genuinely ragged lane
    # counts (or tiny tensors) fall back to a flat jnp.pad.
    no_copy = (n_elems % LANES == 0) and (m_rows >= row_align)
    if no_copy:
        n_rows = m_rows
    else:
        n_rows = max(_round_up(m_rows, row_align), row_align)

    def prep(a):
        if no_copy:
            return a.reshape(n_rows, LANES)
        flat = a.reshape(-1)
        flat = jnp.pad(flat, (0, n_rows * LANES - n_elems))
        return flat.reshape(n_rows, LANES)

    # Tile sizing: largest row-tile within the per-generation VMEM budget,
    # aligned for the dtype, never larger than the slab itself.
    tile_rows = min(max_tile_rows,
                    _round_up(pl.cdiv(n_rows, num_cores), row_align))
    if tile_rows > n_rows:
        tile_rows = (n_rows // row_align) * row_align
    total_tiles = pl.cdiv(n_rows, tile_rows)
    tiles_per_core = pl.cdiv(total_tiles, num_cores)
    has_oob_tiles = num_cores * tiles_per_core > total_tiles
    mask_last_tile = total_tiles * tile_rows * LANES != n_elems
    strip_rows = min(STRIP_ROWS, tile_rows)

    if has_oob_tiles:
        # Clamp so the DMA never targets a fully out-of-range block; the
        # duplicated grid steps are skipped inside the kernel.
        def in_map(p, i):
            return (jnp.minimum(p * tiles_per_core + i, total_tiles - 1), 0)
    else:
        def in_map(p, i):
            return (p * tiles_per_core + i, 0)
    tile_spec = pl.BlockSpec((tile_rows, LANES), in_map)

    inputs = tuple(prep(a) for a in streamed)
    in_specs = [tile_spec] * len(inputs)

    # Explicit VMEM budget: double-buffered input tiles + headroom for strip
    # temporaries and the (8,128) accumulators.
    buf_bytes = sum(2 * tile_rows * LANES * jnp.dtype(x.dtype).itemsize
                    for x in inputs)
    vmem_limit = int(min(max(buf_bytes + (8 << 20), 16 << 20), vmem_cap_bytes))

    kernel = functools.partial(
        _laplace_partial_kernel,
        order=order,
        min_noise=float(min_noise),
        log_dispersion=bool(log_dispersion),
        n_valid=n_elems,
        tile_rows=tile_rows,
        tiles_per_core=tiles_per_core,
        total_tiles=total_tiles,
        strip_rows=strip_rows,
        mask_last_tile=mask_last_tile,
        gate_oob=has_oob_tiles,
    )

    partials = pl.pallas_call(
        kernel,
        out_shape=jax.ShapeDtypeStruct((num_cores * 8, LANES), jnp.float32),
        grid_spec=pltpu.PrefetchScalarGridSpec(
            num_scalar_prefetch=0,
            grid=(num_cores, tiles_per_core),
            in_specs=in_specs,
            out_specs=pl.BlockSpec((8, LANES), lambda p, i: (p, 0)),
        ),
        compiler_params=pltpu.CompilerParams(
            dimension_semantics=("parallel", "arbitrary"),
            vmem_limit_bytes=vmem_limit),
    )(*inputs)

    total = jnp.sum(partials)

    if order == 1:
        return total / jnp.float32(n_elems)
    # NOTE: `not normalizer` maps both None and 0.0 to the mean, exactly
    # mirroring the PyTorch reference's `if not normalizer:` check.
    if not normalizer:
        return total / jnp.float32(n_elems)
    return total / jnp.float32(normalizer)


def _reference(center, dispersion, y, *, order=2, min_noise=0.0,
               log_dispersion=True, normalizer=None):
    deviation = jnp.abs(center - y)
    if order == 1:
        return deviation.mean()
    if log_dispersion:
        mad = jnp.exp(dispersion)
        log_mad = dispersion
    else:
        mad = dispersion
        log_mad = jnp.log(dispersion + 1e-09)
    loss = (deviation + min_noise) / (mad + 1e-09) + log_mad
    if not normalizer:
        return loss.mean()
    return loss.sum() / normalizer


if __name__ == "__main__":
    key = jax.random.PRNGKey(0)
    k1, k2, k3 = jax.random.split(key, 3)
    # NCHW-shaped synthetic inputs: batch=2, channels=4, spatial=16x16
    shape = (2, 4, 16, 16)
    center = jax.random.normal(k1, shape, dtype=jnp.float32)
    dispersion = 0.1 * jax.random.normal(k2, shape, dtype=jnp.float32)
    y = jax.random.normal(k3, shape, dtype=jnp.float32)

    out = laplace_mle_loss(center, dispersion, y)
    jax.block_until_ready(out)
    ref = _reference(center, dispersion, y)
    assert jnp.allclose(out, ref, rtol=1e-5, atol=1e-5), (out, ref)

    # order=1 branch (dispersion not streamed) and explicit normalizer
    out1 = laplace_mle_loss(center, dispersion, y, order=1)
    jax.block_until_ready(out1)
    assert jnp.allclose(out1, _reference(center, dispersion, y, order=1),
                        rtol=1e-5, atol=1e-5)

    out_n = laplace_mle_loss(center, dispersion, y, normalizer=123.0)
    jax.block_until_ready(out_n)
    assert jnp.allclose(out_n, _reference(center, dispersion, y,
                                          normalizer=123.0),
                        rtol=1e-5, atol=1e-5)

    # ragged shape (not a multiple of 128) exercises the pad fallback + mask,
    # plus log_dispersion=False and min_noise != 0
    shape_r = (2, 3, 17, 5)
    kr1, kr2, kr3 = jax.random.split(jax.random.PRNGKey(1), 3)
    c_r = jax.random.normal(kr1, shape_r, dtype=jnp.float32)
    d_r = 0.5 + jnp.abs(jax.random.normal(kr2, shape_r, dtype=jnp.float32))
    y_r = jax.random.normal(kr3, shape_r, dtype=jnp.float32)
    out_r = laplace_mle_loss(c_r, d_r, y_r, min_noise=0.01,
                             log_dispersion=False)
    jax.block_until_ready(out_r)
    ref_r = _reference(c_r, d_r, y_r, min_noise=0.01, log_dispersion=False)
    assert jnp.allclose(out_r, ref_r, rtol=1e-5, atol=1e-5), (out_r, ref_r)

    # 128-aligned but row-ragged shape: zero-copy path with a partial boundary
    # block (garbage rows masked only on the boundary tile).
    shape_p = (3, 5, 16, 16)   # 3840 elems -> 30 rows of 128
    kp1, kp2, kp3 = jax.random.split(jax.random.PRNGKey(2), 3)
    c_p = jax.random.normal(kp1, shape_p, dtype=jnp.float32)
    d_p = 0.1 * jax.random.normal(kp2, shape_p, dtype=jnp.float32)
    y_p = jax.random.normal(kp3, shape_p, dtype=jnp.float32)
    out_p = laplace_mle_loss(c_p, d_p, y_p)
    jax.block_until_ready(out_p)
    ref_p = _reference(c_p, d_p, y_p)
    assert jnp.allclose(out_p, ref_p, rtol=1e-5, atol=1e-5), (out_p, ref_p)

    # larger aligned shape exercises the inner strip loop (tile_rows > 512)
    shape_l = (2, 8, 128, 128)  # 262144 elems -> 2048 rows
    kl1, kl2, kl3 = jax.random.split(jax.random.PRNGKey(3), 3)
    c_l = jax.random.normal(kl1, shape_l, dtype=jnp.float32)
    d_l = 0.1 * jax.random.normal(kl2, shape_l, dtype=jnp.float32)
    y_l = jax.random.normal(kl3, shape_l, dtype=jnp.float32)
    out_l = laplace_mle_loss(c_l, d_l, y_l)
    jax.block_until_ready(out_l)
    ref_l = _reference(c_l, d_l, y_l)
    assert jnp.allclose(out_l, ref_l, rtol=1e-5, atol=1e-5), (out_l, ref_l)

    # bf16 passthrough: stream bf16 (half HBM bytes), upcast in-kernel;
    # reference computed in f32 on the same bf16 values -> tight tolerance.
    c_b = center.astype(jnp.bfloat16)
    d_b = dispersion.astype(jnp.bfloat16)
    y_b = y.astype(jnp.bfloat16)
    out_b = laplace_mle_loss(c_b, d_b, y_b)
    jax.block_until_ready(out_b)
    ref_b = _reference(c_b.astype(jnp.float32), d_b.astype(jnp.float32),
                       y_b.astype(jnp.float32))
    assert jnp.allclose(out_b, ref_b, rtol=1e-4, atol=1e-4), (out_b, ref_b)

    print("KERNEL_OK")
</pallas_src>

<mosaic_0001>
module attributes {stable_mosaic.version = 11 : i64} {
  func.func @_laplace_partial_kernel(%arg0: i32, %arg1: i32, %arg2: memref<16x128xf32, #tpu.memory_space<vmem>>, %arg3: memref<16x128xf32, #tpu.memory_space<vmem>>, %arg4: memref<16x128xf32, #tpu.memory_space<vmem>>, %arg5: memref<8x128xf32, #tpu.memory_space<vmem>>) attributes {dimension_semantics = [#tpu.dimension_semantics<parallel>, #tpu.dimension_semantics<arbitrary>], iteration_bounds = array<i64: 1, 1>, scalar_prefetch = 0 : i64, scratch_operands = 0 : i64, tpu.core_type = #tpu.core_type<tc>, window_params = [{transform_indices = @transform_0, window_bounds = array<i64: 16, 128>}, {transform_indices = @transform_1, window_bounds = array<i64: 16, 128>}, {transform_indices = @transform_2, window_bounds = array<i64: 16, 128>}, {transform_indices = @transform_3, window_bounds = array<i64: 8, 128>}]} {
    %c0_i32 = arith.constant 0 : i32
    %0 = arith.cmpi eq, %arg1, %c0_i32 : i32
    %1 = arith.extui %0 : i1 to i32
    %c0_i32_0 = arith.constant 0 : i32
    %2 = arith.cmpi ne, %1, %c0_i32_0 : i32
    scf.if %2 {
      %cst_11 = arith.constant 0.000000e+00 : f32
      %19 = vector.broadcast %cst_11 : f32 to vector<8x128xf32>
      %c0_12 = arith.constant 0 : index
      %c0_13 = arith.constant 0 : index
      %20 = vector.load %arg5[%c0_12, %c0_13] : memref<8x128xf32, #tpu.memory_space<vmem>>, vector<8x128xf32>
      tpu.vector_store %arg5[%c0_12, %c0_13], %19 {strides = array<i32>} : memref<8x128xf32, #tpu.memory_space<vmem>>, vector<8x128xf32>,
    } else {
    }
    %c0 = arith.constant 0 : index
    %c0_1 = arith.constant 0 : index
    %3 = vector.load %arg2[%c0, %c0_1] : memref<16x128xf32, #tpu.memory_space<vmem>>, vector<16x128xf32>
    %c0_2 = arith.constant 0 : index
    %c0_3 = arith.constant 0 : index
    %4 = vector.load %arg4[%c0_2, %c0_3] : memref<16x128xf32, #tpu.memory_space<vmem>>, vector<16x128xf32>
    %5 = arith.subf %3, %4 : vector<16x128xf32>
    %6 = math.absf %5 : vector<16x128xf32>
    %c0_4 = arith.constant 0 : index
    %c0_5 = arith.constant 0 : index
    %7 = vector.load %arg3[%c0_4, %c0_5] : memref<16x128xf32, #tpu.memory_space<vmem>>, vector<16x128xf32>
    %8 = math.exp %7 : vector<16x128xf32>
    %cst = arith.constant 9.99999971E-10 : f32
    %9 = vector.broadcast %cst : f32 to vector<16x128xf32>
    %10 = arith.addf %8, %9 : vector<16x128xf32>
    %11 = tpu.reciprocal %10 : vector<16x128xf32> -> vector<16x128xf32>
    %12 = arith.mulf %6, %11 : vector<16x128xf32>
    %13 = arith.addf %12, %7 : vector<16x128xf32>
    %c0_6 = arith.constant 0 : index
    %c0_7 = arith.constant 0 : index
    %14 = vector.load %arg5[%c0_6, %c0_7] : memref<8x128xf32, #tpu.memory_space<vmem>>, vector<8x128xf32>
    %15 = vector.shape_cast %13 : vector<16x128xf32> to vector<2x8x128xf32>
    %cst_8 = arith.constant dense<0.000000e+00> : vector<8x128xf32>
    %16 = vector.multi_reduction <add>, %15, %cst_8 [0] : vector<2x8x128xf32> to vector<8x128xf32>
    %17 = arith.addf %14, %16 : vector<8x128xf32>
    %c0_9 = arith.constant 0 : index
    %c0_10 = arith.constant 0 : index
    %18 = vector.load %arg5[%c0_9, %c0_10] : memref<8x128xf32, #tpu.memory_space<vmem>>, vector<8x128xf32>
    tpu.vector_store %arg5[%c0_9, %c0_10], %17 {strides = array<i32>} : memref<8x128xf32, #tpu.memory_space<vmem>>, vector<8x128xf32>,
    return
  }
  func.func @transform_0(%arg0: i32, %arg1: i32) -> (i32, i32) {
    %c1_i32 = arith.constant 1 : i32
    %0 = arith.muli %arg0, %c1_i32 : i32
    %1 = arith.addi %0, %arg1 : i32
    %c0_i32 = arith.constant 0 : i32
    %c0_i32_0 = arith.constant 0 : i32
    return %1, %c0_i32 : i32, i32
  }
  func.func @transform_1(%arg0: i32, %arg1: i32) -> (i32, i32) {
    %c1_i32 = arith.constant 1 : i32
    %0 = arith.muli %arg0, %c1_i32 : i32
    %1 = arith.addi %0, %arg1 : i32
    %c0_i32 = arith.constant 0 : i32
    %c0_i32_0 = arith.constant 0 : i32
    return %1, %c0_i32 : i32, i32
  }
  func.func @transform_2(%arg0: i32, %arg1: i32) -> (i32, i32) {
    %c1_i32 = arith.constant 1 : i32
    %0 = arith.muli %arg0, %c1_i32 : i32
    %1 = arith.addi %0, %arg1 : i32
    %c0_i32 = arith.constant 0 : i32
    %c0_i32_0 = arith.constant 0 : i32
    return %1, %c0_i32 : i32, i32
  }
  func.func @transform_3(%arg0: i32, %arg1: i32) -> (i32, i32) {
    %c0_i32 = arith.constant 0 : i32
    %c0_i32_0 = arith.constant 0 : i32
    return %arg0, %c0_i32 : i32, i32
  }
}

</mosaic_0001>

<bundles_post_ra>
// kernel: tpu_custom_call.1
= control target key start
LH: loop header
LB: loop body
LE: loop exit
PB: predicated region body
PF: predicated region fallthrough
CT: control target
= control target key end

     0   :  { %8 = vsyncpa [#allocation3], 0  ;;  %s320_s0 = inlined_call_operand.hbm [shape: f32[16,128], index: 0, kind: input, shape index: {}]   ;;  %s321_s1 = inlined_call_operand.hbm [shape: f32[16,128], index: 1, kind: input, shape index: {}]   ;;  %s322_s2 = inlined_call_operand.hbm [shape: f32[16,128], index: 2, kind: input, shape index: {}]   ;;  %s323_s3 = inlined_call_operand.hbm [shape: f32[8,128], index: 3, kind: output, shape index: {}]  }
   0x1   :  { %9 = vsyncpa [#allocation6], 0 }
   0x2   :  { %10 = vsyncpa [#allocation4], 0  ;;  %s230_s12 = smov [#allocation5]   ;;  %s231_s14 = smov [#allocation2]  }
   0x3   :  { %s36_s13 = sshll.u32 %s230_s12, 4  ;;  %s20_s15 = sshll.u32 %s231_s14, 4  ;;  %s37_s13 = int_to_ptr.vmem [resolvable:$true] %s36_s13  ;;  %s256_s15 = int_to_ptr.vmem [resolvable:$true] %s20_s15 }
   0x4   :  { %s136_s18 = scalar_lea.hbm %s321_s1, 256 }
   0x5   :  { %p137_p0 = scmp.ne.s32.totalorder %s321_s1, %s136_s18  ;;  %p140_p1 = scmp.lt.u32.totalorder %s136_s18, %s321_s1 }
   0x7   :  { %p142_p2 = pnand %p140_p1, %p137_p0 }
   0x9   :  { %145 = shalt.err (!%p142_p2)
}
   0xa   :  { %s146_s23 = scalar_lea.vmem %s37_s13, 256  ;;  %p151_p4 = scmp.lt.s32.totalorder %s37_s13, %s37_s13 }
   0xb   :  { %p147_p3 = scmp.ne.s32.totalorder %s37_s13, %s146_s23  ;;  %p152_p5 = scmp.lt.s32.totalorder %s146_s23, %s146_s23 }
   0xd   :  { %p153_p6 = por %p152_p5, %p151_p4 }
   0xf   :  { %p154_p7 = pnand %p153_p6, %p147_p3 }
  0x11   :  { %157 = shalt.err (!%p154_p7)
}
  0x12   :  { %s232_s24 = smov 128   ;;  %s233_s25 = smov 8  }
  0x13   :  { %42 = dma.hbm_to_vmem [thread:$0]  %s321_s1, 256, %s37_s13, [#allocation6], %s232_s24, %s232_s24, %s233_s25  }
  0x14   :  { %s158_s30 = scalar_lea.hbm %s320_s0, 256 }
  0x15   :  { %p159_p8 = scmp.ne.s32.totalorder %s320_s0, %s158_s30  ;;  %p162_p9 = scmp.lt.u32.totalorder %s158_s30, %s320_s0 }
  0x17   :  { %p164_p10 = pnand %p162_p9, %p159_p8 }
  0x19   :  { %167 = shalt.err (!%p164_p10)
}
  0x1a   :  { %s168_s8 = scalar_lea.vmem %s256_s15, 256  ;;  %p173_p12 = scmp.lt.s32.totalorder %s256_s15, %s256_s15 }
  0x1b   :  { %p169_p11 = scmp.ne.s32.totalorder %s256_s15, %s168_s8  ;;  %p174_p13 = scmp.lt.s32.totalorder %s168_s8, %s168_s8 }
  0x1d   :  { %p175_p0 = por %p174_p13, %p173_p12 }
  0x1f   :  { %p176_p1 = pnand %p175_p0, %p169_p11 }
  0x21   :  { %179 = shalt.err (!%p176_p1)
}
  0x22   :  { %26 = dma.hbm_to_vmem [thread:$0]  %s320_s0, 256, %s256_s15, [#allocation3], %s232_s24, %s232_s24, %s233_s25  }
  0x23   :  { %s234_s10 = smov [#allocation7]   ;;  %s180_s14 = scalar_lea.hbm %s322_s2, 256 }
  0x24   :  { %s52_s11 = sshll.u32 %s234_s10, 4  ;;  %p181_p2 = scmp.ne.s32.totalorder %s322_s2, %s180_s14  ;;  %s53_s11 = int_to_ptr.vmem [resolvable:$true] %s52_s11 }
  0x25   :  { %p184_p3 = scmp.lt.u32.totalorder %s180_s14, %s322_s2 }
  0x27   :  { %p186_p4 = pnand %p184_p3, %p181_p2 }
  0x29   :  { %189 = shalt.err (!%p186_p4)
}
  0x2a   :  { %s190_s20 = scalar_lea.vmem %s53_s11, 256  ;;  %p195_p6 = scmp.lt.s32.totalorder %s53_s11, %s53_s11 }
  0x2b   :  { %p191_p5 = scmp.ne.s32.totalorder %s53_s11, %s190_s20  ;;  %p196_p7 = scmp.lt.s32.totalorder %s190_s20, %s190_s20 }
  0x2d   :  { %p197_p8 = por %p196_p7, %p195_p6 }
  0x2f   :  { %p198_p9 = pnand %p197_p8, %p191_p5 }
  0x31   :  { %201 = shalt.err (!%p198_p9)
}
  0x32   :  { %58 = dma.hbm_to_vmem [thread:$0]  %s322_s2, 256, %s53_s11, [#allocation6], %s232_s24, %s232_s24, %s233_s25  }
  0x33   :  { %224 = dma.done.wait [#allocation3], 256  }
  0x34   :  { %225 = vsyncadd [#allocation3], 4294967040 }
  0x35   :  { %226 = dma.done.wait [#allocation6], 512  }
  0x36   :  { %227 = vsyncadd [#allocation6], 4294966784  ;;  %v87_v0 = vld [vmem:[#allocation5] sm:$0xff]  ;;  %v88_v1 = vld [vmem:[#allocation5 + $0x8] sm:$0xff]  ;;  %s235_s2 = smov [#allocation8]  }
  0x37   :  { %v89_v2 = vmul.f32 1.442695, %v87_v0  ;;  %v91_v3 = vmul.f32 1.442695, %v88_v1  ;;  %v79_v8 = vld [vmem:[#allocation2] sm:$0xff]  ;;  %v80_v10 = vld [vmem:[#allocation2 + $0x8] sm:$0xff] }
  0x38   :  { %v81_v9 = vld [vmem:[#allocation7] sm:$0xff]  ;;  %v82_v11 = vld [vmem:[#allocation7 + $0x8] sm:$0xff]  ;;  %s111_s21 = sshll.u32 %s235_s2, 4  ;;  %s112_s21 = int_to_ptr.vmem [resolvable:$true] %s111_s21 }
  0x39   :  { %128 = vpow2.f32 %v89_v2  ;;  %v83_v12 = vsub.f32 %v79_v8, %v81_v9  ;;  %v84_v13 = vsub.f32 %v80_v10, %v82_v11  ;;  %s202_s22 = scalar_lea.vmem %s112_s21, 128  ;;  %p207_p11 = scmp.lt.s32.totalorder %s112_s21, %s112_s21 }
  0x3a   :  { %130 = vpow2.f32 %v91_v3  ;;  %p203_p10 = scmp.ne.s32.totalorder %s112_s21, %s202_s22  ;;  %p208_p12 = scmp.lt.s32.totalorder %s202_s22, %s202_s22 }
  0x3b   :  { %v85_v14 = vand.u32 2147483647, %v83_v12  ;;  %v86_v15 = vand.u32 2147483647, %v84_v13 }
  0x3c   :  { %p209_p13 = por %p208_p12, %p207_p11 }
  0x3e   :  { %p210_p0 = pnand %p209_p13, %p203_p10 }
  0x43   :  { %v129_v4 = vpop.eup %128 }
  0x44   :  { %v131_v5 = vpop.eup %130  ;;  %v93_v6 = vadd.f32 1e-09, %v129_v4 }
  0x45   :  { %v94_v7 = vadd.f32 1e-09, %v131_v5 }
  0x46   :  { %132 = vrcp.f32 %v93_v6 }
  0x47   :  { %134 = vrcp.f32 %v94_v7 }
  0x50   :  { %v133_v16 = vpop.eup %132 }
  0x51   :  { %v135_v17 = vpop.eup %134  ;;  %v97_v18 = vmul.f32 %v133_v16, %v85_v14 }
  0x52   :  { %v98_v19 = vmul.f32 %v135_v17, %v86_v15 }
  0x53   :  { %v99_v20 = vadd.f32 %v97_v18, %v87_v0 }
  0x54   :  { %v100_v21 = vadd.f32 %v98_v19, %v88_v1 }
  0x56   :  { %v102_v22 = vadd.f32 %v100_v21, %v99_v20 }
  0x58   :  { %104 = vst [vmem:[#allocation8] sm:$0xff] %v102_v22 }
  0x59   :  { %213 = shalt.err (!%p210_p0)
}
  0x5a   :  { %s214_s25 = scalar_lea.hbm %s323_s3, 128 }
  0x5b   :  { %p215_p1 = scmp.ne.s32.totalorder %s323_s3, %s214_s25  ;;  %p218_p2 = scmp.lt.u32.totalorder %s214_s25, %s323_s3 }
  0x5d   :  { %p220_p3 = pnand %p218_p2, %p215_p1 }
  0x5f   :  { %223 = shalt.err (!%p220_p3)
}
  0x60   :  { %114 = dma.vmem_to_hbm [thread:$0]  %s112_s21, 128, %s323_s3, [#allocation4]  }
  0x61   :  { %228 = dma.done.wait [#allocation4], 128  }
  0x62   :  { %229 = vsyncadd [#allocation4], 4294967168 }
  0x63   :  { %118 = vsyncpa [#allocation3], 1 }
  0x64   :  { %119 = vsyncpa [#allocation6], 1 }
  0x65   :  { %120 = vsyncpa [#allocation4], 1 }

</bundles_post_ra>
